<compile_context>
chip_gen: v5e
topology: v5e:2x2
jax: 0.10.0
libtpu: 0.0.40
codegen_flags: <defaults>
</compile_context>

<pallas_src>
import functools

import jax
import jax.numpy as jnp
from jax import lax
from jax.experimental import pallas as pl
from jax.experimental.pallas import tpu as pltpu

MARGIN = 2.0
EPS = 1e-9


def _sum_tile_to_vreg(t):
    """Sum a (tm, tn) f32 tile down to one (8, 128) vreg using only static,
    vreg-aligned slices + adds (pure VPU).  The final cross-lane reduction is
    deferred to the tiny host-side epilogue."""
    m, n = t.shape
    acc = None
    for r in range(0, m, 8):
        for c in range(0, n, 128):
            blk = t[r:r + 8, c:c + 128]
            acc = blk if acc is None else acc + blk
    return acc


def _features_loss_kernel(lbl_col_ref, lbl_row_ref, n2_col_ref, n2_row_ref,
                          xi_ref, xj_ref, out_ref,
                          acc_pos_ref, acc_neg_ref, *, n_valid, tm, tn):
    i = pl.program_id(0)          # row block  (parallel)
    j = pl.program_id(1)          # col block  (reduction)

    @pl.when(j == 0)
    def _init():
        acc_pos_ref[...] = jnp.zeros_like(acc_pos_ref)
        acc_neg_ref[...] = jnp.zeros_like(acc_neg_ref)

    # Gram matrix on the MXU (f32 accumulation), contracting the feature dim of
    # both operands -> no in-kernel transpose of xj.
    g = lax.dot_general(xi_ref[...], xj_ref[...], (((1,), (1,)), ((), ())),
                        preferred_element_type=jnp.float32)           # (tm, tn)

    ni = n2_col_ref[...]                                              # (tm, 1)
    nj = n2_row_ref[...]                                              # (1, tn)

    # Clamp: f32 cancellation can make the Gram form slightly negative
    # (notably on the diagonal, which must contribute ~0 to dist_pos).
    d2 = jnp.maximum(ni + nj - 2.0 * g, 0.0)                          # (tm, tn)

    # Pair masks: same / different label, restricted to real (unpadded) rows+cols.
    same_lbl = lbl_col_ref[...] == lbl_row_ref[...]                   # (tm, tn)
    row_ids = i * tm + lax.broadcasted_iota(jnp.int32, (tm, 1), 0)
    col_ids = j * tn + lax.broadcasted_iota(jnp.int32, (1, tn), 1)
    valid = (row_ids < n_valid) & (col_ids < n_valid)                 # (tm, tn)
    pos_mask = same_lbl & valid
    neg_mask = jnp.logical_not(same_lbl) & valid

    hinge = jnp.maximum(MARGIN - jnp.sqrt(d2 + EPS), 0.0)

    pos_tile = jnp.where(pos_mask, d2, 0.0)
    neg_tile = jnp.where(neg_mask, hinge * hinge, 0.0)

    # In-loop reduction to (8, 128): same VALU add count as a full-tile RMW
    # accumulator, but ~64x fewer accumulator loads/stores.
    acc_pos_ref[...] += _sum_tile_to_vreg(pos_tile)
    acc_neg_ref[...] += _sum_tile_to_vreg(neg_tile)

    @pl.when(j == pl.num_programs(1) - 1)
    def _finalize():
        out_ref[0, 0, :, :] = acc_pos_ref[...]
        out_ref[0, 1, :, :] = acc_neg_ref[...]


def _choose_block(N: int, D: int, itemsize: int) -> int:
    """128-aligned tile size: as big as possible while keeping the
    double-buffered x tiles (2 inputs x 2 buffers x block*D*itemsize) within
    ~8 MiB (headroom for O(block^2) f32 intermediates inside v7x's 64 MiB VMEM),
    and small enough that gi >= 2 whenever N allows (v7x megacore)."""
    cap = 512
    while cap > 128 and 4 * cap * D * itemsize > 8 * 1024 * 1024:
        cap //= 2
    half = 128 * pl.cdiv(pl.cdiv(N, 2), 128)   # ~half of N, rounded up to 128
    return max(128, min(cap, half))


def _exact_num_pos(labels_i32: jax.Array) -> jax.Array:
    """Exact number of same-label pairs (incl. diagonal) = sum_c count_c^2,
    computed in integer arithmetic (no f32 count accumulation)."""
    n = labels_i32.shape[0]
    s = jnp.sort(labels_i32)
    is_start = jnp.concatenate([jnp.ones((1,), bool), s[1:] != s[:-1]])
    seg = jnp.cumsum(is_start.astype(jnp.int32)) - 1
    counts = jnp.zeros((n,), jnp.int32).at[seg].add(1)
    return jnp.sum(counts * counts)


def features_loss(outputs: jax.Array, labels: jax.Array, *, block: int | None = None) -> jax.Array:
    """outputs: (N, D) features; labels: (N,) int labels -> scalar loss."""
    N, D = outputs.shape
    itemsize = jnp.dtype(outputs.dtype).itemsize
    if block is None:
        block = _choose_block(N, D, itemsize)
    assert block % 128 == 0

    n_pad = pl.cdiv(N, block) * block
    gi = gj = n_pad // block

    x = outputs                                   # native dtype, no wrapper cast
    lbl = labels.astype(jnp.int32)
    x_f = x.astype(jnp.float32)
    norms = jnp.sum(x_f * x_f, axis=1)            # (N,) f32 — single O(N*D) pass
    if n_pad != N:
        x = jnp.pad(x, ((0, n_pad - N), (0, 0)))
        lbl = jnp.pad(lbl, (0, n_pad - N), constant_values=-1)
        norms = jnp.pad(norms, (0, n_pad - N))
    lbl_col = lbl.reshape(n_pad, 1)
    lbl_row = lbl.reshape(1, n_pad)
    n2_col = norms.reshape(n_pad, 1)
    n2_row = norms.reshape(1, n_pad)

    kernel = functools.partial(_features_loss_kernel, n_valid=N, tm=block, tn=block)

    partials = pl.pallas_call(
        kernel,
        out_shape=jax.ShapeDtypeStruct((gi, 2, 8, 128), jnp.float32),
        grid_spec=pltpu.PrefetchScalarGridSpec(
            num_scalar_prefetch=0,
            grid=(gi, gj),
            in_specs=[
                pl.BlockSpec((block, 1), lambda i, j: (i, 0)),      # labels (col)
                pl.BlockSpec((1, block), lambda i, j: (0, j)),      # labels (row)
                pl.BlockSpec((block, 1), lambda i, j: (i, 0)),      # ||x||^2 (col)
                pl.BlockSpec((1, block), lambda i, j: (0, j)),      # ||x||^2 (row)
                pl.BlockSpec((block, D), lambda i, j: (i, 0)),      # x row tile
                pl.BlockSpec((block, D), lambda i, j: (j, 0)),      # x col tile
            ],
            out_specs=pl.BlockSpec((1, 2, 8, 128), lambda i, j: (i, 0, 0, 0)),
            scratch_shapes=[
                pltpu.VMEM((8, 128), jnp.float32),   # dist_pos accumulator slab
                pltpu.VMEM((8, 128), jnp.float32),   # dist_neg accumulator slab
            ],
        ),
        compiler_params=pltpu.CompilerParams(
            dimension_semantics=("parallel", "arbitrary"),
            vmem_limit_bytes=32 * 1024 * 1024,
        ),
    )(lbl_col, lbl_row, n2_col, n2_row, x, x)

    # Tiny epilogue: reduce per-row-block (8,128) partials, exact pair counts,
    # then normalize with the same edge-case handling as the PyTorch module.
    dist_pos = jnp.sum(partials[:, 0])
    dist_neg = jnp.sum(partials[:, 1])
    num_pos = _exact_num_pos(labels.astype(jnp.int32)).astype(jnp.float32)
    num_neg = jnp.asarray(N * N, jnp.float32) - num_pos
    pos_term = jnp.where(num_pos > 0.0, 0.5 * dist_pos / jnp.maximum(num_pos, 1.0), 0.0)
    neg_term = jnp.where(num_neg > 0.0, 0.5 * dist_neg / jnp.maximum(num_neg, 1.0), 0.0)
    return pos_term + neg_term


def features_loss_ref(outputs: jax.Array, labels: jax.Array) -> jax.Array:
    """Pure-JAX reference with the PyTorch double-loop semantics."""
    x = outputs.astype(jnp.float32)
    d2 = jnp.sum((x[:, None, :] - x[None, :, :]) ** 2, axis=-1)
    same = labels[:, None] == labels[None, :]
    num_pos = jnp.sum(same.astype(jnp.float32))
    num_neg = jnp.sum((~same).astype(jnp.float32))
    dist_pos = jnp.sum(jnp.where(same, d2, 0.0))
    hinge = jnp.maximum(MARGIN - jnp.sqrt(d2 + EPS), 0.0)
    dist_neg = jnp.sum(jnp.where(same, 0.0, hinge * hinge))
    pos_term = jnp.where(num_pos > 0, 0.5 * dist_pos / jnp.maximum(num_pos, 1.0), 0.0)
    neg_term = jnp.where(num_neg > 0, 0.5 * dist_neg / jnp.maximum(num_neg, 1.0), 0.0)
    return pos_term + neg_term


if __name__ == "__main__":
    # Primary small test: a batch of penultimate-layer feature vectors + labels.
    k_feat, k_lbl = jax.random.split(jax.random.PRNGKey(0))
    N, D = 8, 32
    outputs = jax.random.normal(k_feat, (N, D), dtype=jnp.float32)
    labels = jax.random.randint(k_lbl, (N,), 0, 3, dtype=jnp.int32)

    loss = features_loss(outputs, labels)
    jax.block_until_ready(loss)
    ref = features_loss_ref(outputs, labels)
    assert jnp.allclose(loss, ref, rtol=2e-4, atol=1e-4), (loss, ref)

    # Secondary check exercising the multi-tile grid + padding path
    # (N not a multiple of the tile width -> gi = gj = 2 with block=256).
    k_feat2, k_lbl2 = jax.random.split(jax.random.PRNGKey(1))
    N2, D2 = 300, 64
    outputs2 = jax.random.normal(k_feat2, (N2, D2), dtype=jnp.float32)
    labels2 = jax.random.randint(k_lbl2, (N2,), 0, 5, dtype=jnp.int32)
    loss2 = features_loss(outputs2, labels2)
    jax.block_until_ready(loss2)
    ref2 = features_loss_ref(outputs2, labels2)
    assert jnp.allclose(loss2, ref2, rtol=2e-4, atol=1e-4), (loss2, ref2)

    print("KERNEL_OK")
</pallas_src>

<mosaic_0001>
module attributes {stable_mosaic.version = 11 : i64} {
  func.func @_features_loss_kernel(%arg0: i32, %arg1: i32, %arg2: memref<128x1xi32, #tpu.memory_space<vmem>>, %arg3: memref<1x128xi32, #tpu.memory_space<vmem>>, %arg4: memref<128x1xf32, #tpu.memory_space<vmem>>, %arg5: memref<1x128xf32, #tpu.memory_space<vmem>>, %arg6: memref<128x32xf32, #tpu.memory_space<vmem>>, %arg7: memref<128x32xf32, #tpu.memory_space<vmem>>, %arg8: memref<1x2x8x128xf32, #tpu.memory_space<vmem>>, %arg9: memref<8x128xf32, #tpu.memory_space<vmem>>, %arg10: memref<8x128xf32, #tpu.memory_space<vmem>>) attributes {dimension_semantics = [#tpu.dimension_semantics<parallel>, #tpu.dimension_semantics<arbitrary>], iteration_bounds = array<i64: 1, 1>, scalar_prefetch = 0 : i64, scratch_operands = 2 : i64, tpu.core_type = #tpu.core_type<tc>, window_params = [{transform_indices = @transform_0, window_bounds = array<i64: 128, 1>}, {transform_indices = @transform_1, window_bounds = array<i64: 1, 128>}, {transform_indices = @transform_2, window_bounds = array<i64: 128, 1>}, {transform_indices = @transform_3, window_bounds = array<i64: 1, 128>}, {transform_indices = @transform_4, window_bounds = array<i64: 128, 32>}, {transform_indices = @transform_5, window_bounds = array<i64: 128, 32>}, {transform_indices = @transform_6, window_bounds = array<i64: 1, 2, 8, 128>}]} {
    %c0_i32 = arith.constant 0 : i32
    %0 = arith.cmpi eq, %arg1, %c0_i32 : i32
    %1 = arith.extui %0 : i1 to i32
    %c0_i32_0 = arith.constant 0 : i32
    %2 = arith.cmpi ne, %1, %c0_i32_0 : i32
    scf.if %2 {
      %cst_32 = arith.constant 0.000000e+00 : f32
      %122 = vector.broadcast %cst_32 : f32 to vector<8x128xf32>
      %c0_33 = arith.constant 0 : index
      %c0_34 = arith.constant 0 : index
      %123 = vector.load %arg9[%c0_33, %c0_34] : memref<8x128xf32, #tpu.memory_space<vmem>>, vector<8x128xf32>
      tpu.vector_store %arg9[%c0_33, %c0_34], %122 {strides = array<i32>} : memref<8x128xf32, #tpu.memory_space<vmem>>, vector<8x128xf32>,
      %cst_35 = arith.constant 0.000000e+00 : f32
      %124 = vector.broadcast %cst_35 : f32 to vector<8x128xf32>
      %c0_36 = arith.constant 0 : index
      %c0_37 = arith.constant 0 : index
      %125 = vector.load %arg10[%c0_36, %c0_37] : memref<8x128xf32, #tpu.memory_space<vmem>>, vector<8x128xf32>
      tpu.vector_store %arg10[%c0_36, %c0_37], %124 {strides = array<i32>} : memref<8x128xf32, #tpu.memory_space<vmem>>, vector<8x128xf32>,
    } else {
    }
    %c0 = arith.constant 0 : index
    %c0_1 = arith.constant 0 : index
    %3 = vector.load %arg6[%c0, %c0_1] : memref<128x32xf32, #tpu.memory_space<vmem>>, vector<128x32xf32>
    %c0_2 = arith.constant 0 : index
    %c0_3 = arith.constant 0 : index
    %4 = vector.load %arg7[%c0_2, %c0_3] : memref<128x32xf32, #tpu.memory_space<vmem>>, vector<128x32xf32>
    %cst = arith.constant dense<0.000000e+00> : vector<128x128xf32>
    %5 = tpu.matmul %3, %4, %cst {dimension_numbers = #tpu.dot_dimension_numbers<[1], [1], [0], [0], [0, 0, 1, 0], [], []>} : vector<128x32xf32>, vector<128x32xf32>, vector<128x128xf32> -> vector<128x128xf32>
    %c0_4 = arith.constant 0 : index
    %c0_5 = arith.constant 0 : index
    %6 = vector.load %arg4[%c0_4, %c0_5] : memref<128x1xf32, #tpu.memory_space<vmem>>, vector<128x1xf32>
    %c0_6 = arith.constant 0 : index
    %c0_7 = arith.constant 0 : index
    %7 = vector.load %arg5[%c0_6, %c0_7] : memref<1x128xf32, #tpu.memory_space<vmem>>, vector<1x128xf32>
    %8 = vector.broadcast %6 : vector<128x1xf32> to vector<128x128xf32>
    %9 = vector.broadcast %7 : vector<1x128xf32> to vector<128x128xf32>
    %10 = arith.addf %8, %9 : vector<128x128xf32>
    %cst_8 = arith.constant 2.000000e+00 : f32
    %11 = vector.broadcast %cst_8 : f32 to vector<128x128xf32>
    %12 = arith.mulf %11, %5 : vector<128x128xf32>
    %13 = arith.subf %10, %12 : vector<128x128xf32>
    %cst_9 = arith.constant 0.000000e+00 : f32
    %14 = vector.broadcast %cst_9 : f32 to vector<128x128xf32>
    %15 = arith.maximumf %13, %14 : vector<128x128xf32>
    %c0_10 = arith.constant 0 : index
    %c0_11 = arith.constant 0 : index
    %16 = vector.load %arg2[%c0_10, %c0_11] : memref<128x1xi32, #tpu.memory_space<vmem>>, vector<128x1xi32>
    %c0_12 = arith.constant 0 : index
    %c0_13 = arith.constant 0 : index
    %17 = vector.load %arg3[%c0_12, %c0_13] : memref<1x128xi32, #tpu.memory_space<vmem>>, vector<1x128xi32>
    %18 = vector.broadcast %16 : vector<128x1xi32> to vector<128x128xi32>
    %19 = vector.broadcast %17 : vector<1x128xi32> to vector<128x128xi32>
    %20 = arith.cmpi eq, %18, %19 : vector<128x128xi32>
    %c128_i32 = arith.constant 128 : i32
    %21 = arith.muli %arg0, %c128_i32 : i32
    %22 = tpu.iota {dimensions = array<i32: 0>} : vector<128x1xi32>
    %23 = vector.broadcast %21 : i32 to vector<128x1xi32>
    %24 = arith.addi %23, %22 : vector<128x1xi32>
    %c128_i32_14 = arith.constant 128 : i32
    %25 = arith.muli %arg1, %c128_i32_14 : i32
    %26 = tpu.iota {dimensions = array<i32: 1>} : vector<1x128xi32>
    %27 = vector.broadcast %25 : i32 to vector<1x128xi32>
    %28 = arith.addi %27, %26 : vector<1x128xi32>
    %c8_i32 = arith.constant 8 : i32
    %29 = vector.broadcast %c8_i32 : i32 to vector<128x1xi32>
    %30 = arith.cmpi slt, %24, %29 : vector<128x1xi32>
    %c8_i32_15 = arith.constant 8 : i32
    %31 = vector.broadcast %c8_i32_15 : i32 to vector<1x128xi32>
    %32 = arith.cmpi slt, %28, %31 : vector<1x128xi32>
    %33 = vector.broadcast %30 : vector<128x1xi1> to vector<128x128xi1>
    %34 = vector.broadcast %32 : vector<1x128xi1> to vector<128x128xi1>
    %35 = arith.andi %33, %34 : vector<128x128xi1>
    %36 = arith.andi %20, %35 : vector<128x128xi1>
    %cst_16 = arith.constant dense<true> : vector<128x128xi1>
    %37 = arith.xori %20, %cst_16 : vector<128x128xi1>
    %38 = arith.andi %37, %35 : vector<128x128xi1>
    %cst_17 = arith.constant 9.99999971E-10 : f32
    %39 = vector.broadcast %cst_17 : f32 to vector<128x128xf32>
    %40 = arith.addf %15, %39 : vector<128x128xf32>
    %41 = math.sqrt %40 : vector<128x128xf32>
    %cst_18 = arith.constant 2.000000e+00 : f32
    %42 = vector.broadcast %cst_18 : f32 to vector<128x128xf32>
    %43 = arith.subf %42, %41 : vector<128x128xf32>
    %cst_19 = arith.constant 0.000000e+00 : f32
    %44 = vector.broadcast %cst_19 : f32 to vector<128x128xf32>
    %45 = arith.maximumf %43, %44 : vector<128x128xf32>
    %cst_20 = arith.constant 0.000000e+00 : f32
    %46 = vector.broadcast %cst_20 : f32 to vector<128x128xf32>
    %47 = arith.select %36, %15, %46 : vector<128x128xi1>, vector<128x128xf32>
    %48 = arith.mulf %45, %45 : vector<128x128xf32>
    %cst_21 = arith.constant 0.000000e+00 : f32
    %49 = vector.broadcast %cst_21 : f32 to vector<128x128xf32>
    %50 = arith.select %38, %48, %49 : vector<128x128xi1>, vector<128x128xf32>
    %c0_22 = arith.constant 0 : index
    %c0_23 = arith.constant 0 : index
    %51 = vector.load %arg9[%c0_22, %c0_23] : memref<8x128xf32, #tpu.memory_space<vmem>>, vector<8x128xf32>
    %52 = vector.extract_strided_slice %47 {offsets = [0, 0], sizes = [8, 128], strides = [1, 1]} : vector<128x128xf32> to vector<8x128xf32>
    %53 = vector.extract_strided_slice %47 {offsets = [8, 0], sizes = [8, 128], strides = [1, 1]} : vector<128x128xf32> to vector<8x128xf32>
    %54 = arith.addf %52, %53 : vector<8x128xf32>
    %55 = vector.extract_strided_slice %47 {offsets = [16, 0], sizes = [8, 128], strides = [1, 1]} : vector<128x128xf32> to vector<8x128xf32>
    %56 = arith.addf %54, %55 : vector<8x128xf32>
    %57 = vector.extract_strided_slice %47 {offsets = [24, 0], sizes = [8, 128], strides = [1, 1]} : vector<128x128xf32> to vector<8x128xf32>
    %58 = arith.addf %56, %57 : vector<8x128xf32>
    %59 = vector.extract_strided_slice %47 {offsets = [32, 0], sizes = [8, 128], strides = [1, 1]} : vector<128x128xf32> to vector<8x128xf32>
    %60 = arith.addf %58, %59 : vector<8x128xf32>
    %61 = vector.extract_strided_slice %47 {offsets = [40, 0], sizes = [8, 128], strides = [1, 1]} : vector<128x128xf32> to vector<8x128xf32>
    %62 = arith.addf %60, %61 : vector<8x128xf32>
    %63 = vector.extract_strided_slice %47 {offsets = [48, 0], sizes = [8, 128], strides = [1, 1]} : vector<128x128xf32> to vector<8x128xf32>
    %64 = arith.addf %62, %63 : vector<8x128xf32>
    %65 = vector.extract_strided_slice %47 {offsets = [56, 0], sizes = [8, 128], strides = [1, 1]} : vector<128x128xf32> to vector<8x128xf32>
    %66 = arith.addf %64, %65 : vector<8x128xf32>
    %67 = vector.extract_strided_slice %47 {offsets = [64, 0], sizes = [8, 128], strides = [1, 1]} : vector<128x128xf32> to vector<8x128xf32>
    %68 = arith.addf %66, %67 : vector<8x128xf32>
    %69 = vector.extract_strided_slice %47 {offsets = [72, 0], sizes = [8, 128], strides = [1, 1]} : vector<128x128xf32> to vector<8x128xf32>
    %70 = arith.addf %68, %69 : vector<8x128xf32>
    %71 = vector.extract_strided_slice %47 {offsets = [80, 0], sizes = [8, 128], strides = [1, 1]} : vector<128x128xf32> to vector<8x128xf32>
    %72 = arith.addf %70, %71 : vector<8x128xf32>
    %73 = vector.extract_strided_slice %47 {offsets = [88, 0], sizes = [8, 128], strides = [1, 1]} : vector<128x128xf32> to vector<8x128xf32>
    %74 = arith.addf %72, %73 : vector<8x128xf32>
    %75 = vector.extract_strided_slice %47 {offsets = [96, 0], sizes = [8, 128], strides = [1, 1]} : vector<128x128xf32> to vector<8x128xf32>
    %76 = arith.addf %74, %75 : vector<8x128xf32>
    %77 = vector.extract_strided_slice %47 {offsets = [104, 0], sizes = [8, 128], strides = [1, 1]} : vector<128x128xf32> to vector<8x128xf32>
    %78 = arith.addf %76, %77 : vector<8x128xf32>
    %79 = vector.extract_strided_slice %47 {offsets = [112, 0], sizes = [8, 128], strides = [1, 1]} : vector<128x128xf32> to vector<8x128xf32>
    %80 = arith.addf %78, %79 : vector<8x128xf32>
    %81 = vector.extract_strided_slice %47 {offsets = [120, 0], sizes = [8, 128], strides = [1, 1]} : vector<128x128xf32> to vector<8x128xf32>
    %82 = arith.addf %80, %81 : vector<8x128xf32>
    %83 = arith.addf %51, %82 : vector<8x128xf32>
    %c0_24 = arith.constant 0 : index
    %c0_25 = arith.constant 0 : index
    %84 = vector.load %arg9[%c0_24, %c0_25] : memref<8x128xf32, #tpu.memory_space<vmem>>, vector<8x128xf32>
    tpu.vector_store %arg9[%c0_24, %c0_25], %83 {strides = array<i32>} : memref<8x128xf32, #tpu.memory_space<vmem>>, vector<8x128xf32>,
    %c0_26 = arith.constant 0 : index
    %c0_27 = arith.constant 0 : index
    %85 = vector.load %arg10[%c0_26, %c0_27] : memref<8x128xf32, #tpu.memory_space<vmem>>, vector<8x128xf32>
    %86 = vector.extract_strided_slice %50 {offsets = [0, 0], sizes = [8, 128], strides = [1, 1]} : vector<128x128xf32> to vector<8x128xf32>
    %87 = vector.extract_strided_slice %50 {offsets = [8, 0], sizes = [8, 128], strides = [1, 1]} : vector<128x128xf32> to vector<8x128xf32>
    %88 = arith.addf %86, %87 : vector<8x128xf32>
    %89 = vector.extract_strided_slice %50 {offsets = [16, 0], sizes = [8, 128], strides = [1, 1]} : vector<128x128xf32> to vector<8x128xf32>
    %90 = arith.addf %88, %89 : vector<8x128xf32>
    %91 = vector.extract_strided_slice %50 {offsets = [24, 0], sizes = [8, 128], strides = [1, 1]} : vector<128x128xf32> to vector<8x128xf32>
    %92 = arith.addf %90, %91 : vector<8x128xf32>
    %93 = vector.extract_strided_slice %50 {offsets = [32, 0], sizes = [8, 128], strides = [1, 1]} : vector<128x128xf32> to vector<8x128xf32>
    %94 = arith.addf %92, %93 : vector<8x128xf32>
    %95 = vector.extract_strided_slice %50 {offsets = [40, 0], sizes = [8, 128], strides = [1, 1]} : vector<128x128xf32> to vector<8x128xf32>
    %96 = arith.addf %94, %95 : vector<8x128xf32>
    %97 = vector.extract_strided_slice %50 {offsets = [48, 0], sizes = [8, 128], strides = [1, 1]} : vector<128x128xf32> to vector<8x128xf32>
    %98 = arith.addf %96, %97 : vector<8x128xf32>
    %99 = vector.extract_strided_slice %50 {offsets = [56, 0], sizes = [8, 128], strides = [1, 1]} : vector<128x128xf32> to vector<8x128xf32>
    %100 = arith.addf %98, %99 : vector<8x128xf32>
    %101 = vector.extract_strided_slice %50 {offsets = [64, 0], sizes = [8, 128], strides = [1, 1]} : vector<128x128xf32> to vector<8x128xf32>
    %102 = arith.addf %100, %101 : vector<8x128xf32>
    %103 = vector.extract_strided_slice %50 {offsets = [72, 0], sizes = [8, 128], strides = [1, 1]} : vector<128x128xf32> to vector<8x128xf32>
    %104 = arith.addf %102, %103 : vector<8x128xf32>
    %105 = vector.extract_strided_slice %50 {offsets = [80, 0], sizes = [8, 128], strides = [1, 1]} : vector<128x128xf32> to vector<8x128xf32>
    %106 = arith.addf %104, %105 : vector<8x128xf32>
    %107 = vector.extract_strided_slice %50 {offsets = [88, 0], sizes = [8, 128], strides = [1, 1]} : vector<128x128xf32> to vector<8x128xf32>
    %108 = arith.addf %106, %107 : vector<8x128xf32>
    %109 = vector.extract_strided_slice %50 {offsets = [96, 0], sizes = [8, 128], strides = [1, 1]} : vector<128x128xf32> to vector<8x128xf32>
    %110 = arith.addf %108, %109 : vector<8x128xf32>
    %111 = vector.extract_strided_slice %50 {offsets = [104, 0], sizes = [8, 128], strides = [1, 1]} : vector<128x128xf32> to vector<8x128xf32>
    %112 = arith.addf %110, %111 : vector<8x128xf32>
    %113 = vector.extract_strided_slice %50 {offsets = [112, 0], sizes = [8, 128], strides = [1, 1]} : vector<128x128xf32> to vector<8x128xf32>
    %114 = arith.addf %112, %113 : vector<8x128xf32>
    %115 = vector.extract_strided_slice %50 {offsets = [120, 0], sizes = [8, 128], strides = [1, 1]} : vector<128x128xf32> to vector<8x128xf32>
    %116 = arith.addf %114, %115 : vector<8x128xf32>
    %117 = arith.addf %85, %116 : vector<8x128xf32>
    %c0_28 = arith.constant 0 : index
    %c0_29 = arith.constant 0 : index
    %118 = vector.load %arg10[%c0_28, %c0_29] : memref<8x128xf32, #tpu.memory_space<vmem>>, vector<8x128xf32>
    tpu.vector_store %arg10[%c0_28, %c0_29], %117 {strides = array<i32>} : memref<8x128xf32, #tpu.memory_space<vmem>>, vector<8x128xf32>,
    %c0_i32_30 = arith.constant 0 : i32
    %119 = arith.cmpi eq, %arg1, %c0_i32_30 : i32
    %120 = arith.extui %119 : i1 to i32
    %c0_i32_31 = arith.constant 0 : i32
    %121 = arith.cmpi ne, %120, %c0_i32_31 : i32
    scf.if %121 {
      %c0_32 = arith.constant 0 : index
      %c0_33 = arith.constant 0 : index
      %122 = vector.load %arg9[%c0_32, %c0_33] : memref<8x128xf32, #tpu.memory_space<vmem>>, vector<8x128xf32>
      %c0_34 = arith.constant 0 : index
      %c0_35 = arith.constant 0 : index
      %c0_36 = arith.constant 0 : index
      %c0_37 = arith.constant 0 : index
      %123 = vector.load %arg8[%c0_34, %c0_35, %c0_36, %c0_37] : memref<1x2x8x128xf32, #tpu.memory_space<vmem>>, vector<1x1x8x128xf32>
      %124 = vector.shape_cast %123 : vector<1x1x8x128xf32> to vector<8x128xf32>
      %125 = vector.shape_cast %122 : vector<8x128xf32> to vector<1x1x8x128xf32>
      tpu.vector_store %arg8[%c0_34, %c0_35, %c0_36, %c0_37], %125 {strides = array<i32>} : memref<1x2x8x128xf32, #tpu.memory_space<vmem>>, vector<1x1x8x128xf32>,
      %c0_38 = arith.constant 0 : index
      %c0_39 = arith.constant 0 : index
      %126 = vector.load %arg10[%c0_38, %c0_39] : memref<8x128xf32, #tpu.memory_space<vmem>>, vector<8x128xf32>
      %c0_40 = arith.constant 0 : index
      %c1 = arith.constant 1 : index
      %c0_41 = arith.constant 0 : index
      %c0_42 = arith.constant 0 : index
      %127 = vector.load %arg8[%c0_40, %c1, %c0_41, %c0_42] : memref<1x2x8x128xf32, #tpu.memory_space<vmem>>, vector<1x1x8x128xf32>
      %128 = vector.shape_cast %127 : vector<1x1x8x128xf32> to vector<8x128xf32>
      %129 = vector.shape_cast %126 : vector<8x128xf32> to vector<1x1x8x128xf32>
      tpu.vector_store %arg8[%c0_40, %c1, %c0_41, %c0_42], %129 {strides = array<i32>} : memref<1x2x8x128xf32, #tpu.memory_space<vmem>>, vector<1x1x8x128xf32>,
    } else {
    }
    return
  }
  func.func @transform_0(%arg0: i32, %arg1: i32) -> (i32, i32) {
    %c0_i32 = arith.constant 0 : i32
    %c0_i32_0 = arith.constant 0 : i32
    return %arg0, %c0_i32 : i32, i32
  }
  func.func @transform_1(%arg0: i32, %arg1: i32) -> (i32, i32) {
    %c0_i32 = arith.constant 0 : i32
    %c0_i32_0 = arith.constant 0 : i32
    return %c0_i32, %arg1 : i32, i32
  }
  func.func @transform_2(%arg0: i32, %arg1: i32) -> (i32, i32) {
    %c0_i32 = arith.constant 0 : i32
    %c0_i32_0 = arith.constant 0 : i32
    return %arg0, %c0_i32 : i32, i32
  }
  func.func @transform_3(%arg0: i32, %arg1: i32) -> (i32, i32) {
    %c0_i32 = arith.constant 0 : i32
    %c0_i32_0 = arith.constant 0 : i32
    return %c0_i32, %arg1 : i32, i32
  }
  func.func @transform_4(%arg0: i32, %arg1: i32) -> (i32, i32) {
    %c0_i32 = arith.constant 0 : i32
    %c0_i32_0 = arith.constant 0 : i32
    return %arg0, %c0_i32 : i32, i32
  }
  func.func @transform_5(%arg0: i32, %arg1: i32) -> (i32, i32) {
    %c0_i32 = arith.constant 0 : i32
    %c0_i32_0 = arith.constant 0 : i32
    return %arg1, %c0_i32 : i32, i32
  }
  func.func @transform_6(%arg0: i32, %arg1: i32) -> (i32, i32, i32, i32) {
    %c0_i32 = arith.constant 0 : i32
    %c0_i32_0 = arith.constant 0 : i32
    %c0_i32_1 = arith.constant 0 : i32
    %c0_i32_2 = arith.constant 0 : i32
    return %arg0, %c0_i32, %c0_i32_0, %c0_i32_1 : i32, i32, i32, i32
  }
}

</mosaic_0001>

<bundles_post_ra>
// kernel: tpu_custom_call.1
= control target key start
LH: loop header
LB: loop body
LE: loop exit
PB: predicated region body
PF: predicated region fallthrough
CT: control target
= control target key end

     0   :  { %vm62_vm0 = vcmask 261120   ;;  %s1326_s0 = inlined_call_operand.vmem [shape: s32[128,1], index: 0, kind: input, shape index: {}]   ;;  %s1327_s1 = inlined_call_operand.vmem [shape: s32[1,128], index: 1, kind: input, shape index: {}]   ;;  %s1328_s2 = inlined_call_operand.vmem [shape: f32[128,1], index: 2, kind: input, shape index: {}]   ;;  %s1329_s3 = inlined_call_operand.vmem [shape: f32[1,128], index: 3, kind: input, shape index: {}]   ;;  %s1330_s4 = inlined_call_operand.vmem [shape: f32[128,32], index: 4, kind: input, shape index: {}]   ;;  %s1331_s5 = inlined_call_operand.vmem [shape: f32[128,32], index: 5, kind: input, shape index: {}]   ;;  %s1332_s6 = inlined_call_operand.hbm [shape: f32[1,2,8,128], index: 6, kind: output, shape index: {}]  }
   0x1   :  { %v61_v0 = vld [vmem:[%s1331_s5 + $0x78] sm:$0xff]  ;;  %v60_v1 = vld [vmem:[%s1331_s5 + $0x70] sm:$0xff] }
   0x2   :  { %975 = vmatpush.xpose.msk.msra.mxu0 %vm62_vm0, %v61_v0  ;;  %1008 = vmatpush.xpose.msk.msra.mxu2 %vm62_vm0, %v61_v0 }
   0x3   :  { %1009 = vmatpush.xpose.msk.msra.mxu3 %vm62_vm0, %v61_v0  ;;  %1007 = vmatpush.xpose.msk.msra.mxu1 %vm62_vm0, %v61_v0 }
   0x4   :  { %11 = vsyncpa [#allocation5], 0  ;;  %v59_v2 = vld [vmem:[%s1331_s5 + $0x68] sm:$0xff]  ;;  %v58_v3 = vld [vmem:[%s1331_s5 + $0x60] sm:$0xff]  ;;  %v1091_v11 = vmov 0   ;;  %v506_v37 = vlaneseq  ;;  %s963_s16 = sshll.u32 %s1332_s6, 4  ;;  %s964_s16 = int_to_ptr.hbm [resolvable:$true] %s963_s16 }
   0x5   :  { %v57_v4 = vld [vmem:[%s1331_s5 + $0x58] sm:$0xff]  ;;  %v56_v5 = vld [vmem:[%s1331_s5 + $0x50] sm:$0xff]  ;;  %v55_v6 = vld [vmem:[%s1331_s5 + $0x48] sm:$0xff]  ;;  %1060 = vset.pattern.permute.xlu0 %v1091_v11  ;;  %vm1093_vm6 = vmmov 1   ;;  %s1094_s17 = smov 128   ;;  %s1095_s18 = smov 8  }
   0x6   :  { %976 = vmatpush.xpose.msk.msra.mxu0 %vm62_vm0, %v60_v1  ;;  %1011 = vmatpush.xpose.msk.msra.mxu2 %vm62_vm0, %v60_v1  ;;  %v54_v7 = vld [vmem:[%s1331_s5 + $0x40] sm:$0xff]  ;;  %v53_v8 = vld [vmem:[%s1331_s5 + $0x38] sm:$0xff]  ;;  %v52_v10 = vld [vmem:[%s1331_s5 + $0x30] sm:$0xff]  ;;  %v507_v40 = vand.u32 127, %v506_v37 }
   0x7   :  { %1012 = vmatpush.xpose.msk.msra.mxu3 %vm62_vm0, %v60_v1  ;;  %1010 = vmatpush.xpose.msk.msra.mxu1 %vm62_vm0, %v60_v1  ;;  %v224_v9 = vld [vmem:[%s1328_s2] sm:$0xff]  ;;  %v51_v12 = vld [vmem:[%s1331_s5 + $0x28] sm:$0xff]  ;;  %v49_v15 = vld [vmem:[%s1331_s5 + $0x18] sm:$0xff] }
   0x8   :  { %243 = vperm.xlu0 %1060, %v224_v9   ;;  %v388_v13 = vld [vmem:[%s1326_s0] sm:$0xff]  ;;  %v48_v16 = vld [vmem:[%s1331_s5 + $0x10] sm:$0xff]  ;;  %v47_v17 = vld [vmem:[%s1331_s5 + $0x8] sm:$0xff]  ;;  %vm526_vm1 = vcmp.lt.s32.totalorder %v507_v40, 8 }
   0x9   :  { %v50_v14 = vld [vmem:[%s1331_s5 + $0x20] sm:$0xff]  ;;  %v39_v23 = vld [vmem:[%s1330_s4 + $0x48] sm:$0xff]  ;;  %v40_v27 = vld [vmem:[%s1330_s4 + $0x50] sm:$0xff] }
   0xa   :  { %977 = vmatpush.xpose.msk.msra.mxu0 %vm62_vm0, %v59_v2  ;;  %1014 = vmatpush.xpose.msk.msra.mxu2 %vm62_vm0, %v59_v2  ;;  %v46_v18 = vld [vmem:[%s1331_s5] sm:$0xff]  ;;  %v31_v24 = vld [vmem:[%s1330_s4 + $0x8] sm:$0xff]  ;;  %v32_v28 = vld [vmem:[%s1330_s4 + $0x10] sm:$0xff] }
   0xb   :  { %1015 = vmatpush.xpose.msk.msra.mxu3 %vm62_vm0, %v59_v2  ;;  %1013 = vmatpush.xpose.msk.msra.mxu1 %vm62_vm0, %v59_v2  ;;  %v30_v19 = vld [vmem:[%s1330_s4] sm:$0xff]  ;;  %v43_v25 = vld [vmem:[%s1330_s4 + $0x68] sm:$0xff]  ;;  %v44_v29 = vld [vmem:[%s1330_s4 + $0x70] sm:$0xff] }
   0xc   :  { %v38_v20 = vld [vmem:[%s1330_s4 + $0x40] sm:$0xff]  ;;  %v35_v26 = vld [vmem:[%s1330_s4 + $0x28] sm:$0xff]  ;;  %v36_v30 = vld [vmem:[%s1330_s4 + $0x30] sm:$0xff] }
   0xd   :  { %v42_v21 = vld [vmem:[%s1330_s4 + $0x60] sm:$0xff]  ;;  %v41_v31 = vld [vmem:[%s1330_s4 + $0x58] sm:$0xff] }
   0xe   :  { %978 = vmatpush.xpose.msk.msra.mxu0 %vm62_vm0, %v58_v3  ;;  %1017 = vmatpush.xpose.msk.msra.mxu2 %vm62_vm0, %v58_v3  ;;  %v34_v22 = vld [vmem:[%s1330_s4 + $0x20] sm:$0xff]  ;;  %v33_v32 = vld [vmem:[%s1330_s4 + $0x18] sm:$0xff] }
   0xf   :  { %1018 = vmatpush.xpose.msk.msra.mxu3 %vm62_vm0, %v58_v3  ;;  %1016 = vmatpush.xpose.msk.msra.mxu1 %vm62_vm0, %v58_v3  ;;  %v45_v33 = vld [vmem:[%s1330_s4 + $0x78] sm:$0xff]  ;;  %v1061_v36 = vld [vmem:[%s1329_s3] ss:$0 sm:$0xff] }
  0x10   :  { %406 = vperm.xlu0 %1060, %v388_v13   ;;  %v37_v34 = vld [vmem:[%s1330_s4 + $0x38] sm:$0xff]  ;;  %v1062_v39 = vld [vmem:[%s1327_s1] ss:$0 sm:$0xff]  ;;  %s1092_s1 = smov [#allocation4]  }
  0x11   :  { %s961_s3 = sshll.u32 %s1092_s1, 4  ;;  %s962_s3 = int_to_ptr.vmem [resolvable:$true] %s961_s3 }
  0x12   :  { %979 = vmatpush.xpose.msk.msra.mxu0 %vm62_vm0, %v57_v4  ;;  %1020 = vmatpush.xpose.msk.msra.mxu2 %vm62_vm0, %v57_v4 }
  0x13   :  { %1021 = vmatpush.xpose.msk.msra.mxu3 %vm62_vm0, %v57_v4  ;;  %1019 = vmatpush.xpose.msk.msra.mxu1 %vm62_vm0, %v57_v4 }
  0x16   :  { %980 = vmatpush.xpose.msk.msra.mxu0 %vm62_vm0, %v56_v5  ;;  %1023 = vmatpush.xpose.msk.msra.mxu2 %vm62_vm0, %v56_v5 }
  0x17   :  { %1024 = vmatpush.xpose.msk.msra.mxu3 %vm62_vm0, %v56_v5  ;;  %1022 = vmatpush.xpose.msk.msra.mxu1 %vm62_vm0, %v56_v5 }
  0x1a   :  { %981 = vmatpush.xpose.msk.msra.mxu0 %vm62_vm0, %v55_v6  ;;  %1026 = vmatpush.xpose.msk.msra.mxu2 %vm62_vm0, %v55_v6 }
  0x1b   :  { %1027 = vmatpush.xpose.msk.msra.mxu3 %vm62_vm0, %v55_v6  ;;  %1025 = vmatpush.xpose.msk.msra.mxu1 %vm62_vm0, %v55_v6 }
  0x1e   :  { %982 = vmatpush.xpose.msk.msra.mxu0 %vm62_vm0, %v54_v7  ;;  %1029 = vmatpush.xpose.msk.msra.mxu2 %vm62_vm0, %v54_v7 }
  0x1f   :  { %1030 = vmatpush.xpose.msk.msra.mxu3 %vm62_vm0, %v54_v7  ;;  %1028 = vmatpush.xpose.msk.msra.mxu1 %vm62_vm0, %v54_v7 }
  0x22   :  { %983 = vmatpush.xpose.msk.msra.mxu0 %vm62_vm0, %v53_v8  ;;  %1032 = vmatpush.xpose.msk.msra.mxu2 %vm62_vm0, %v53_v8 }
  0x23   :  { %1033 = vmatpush.xpose.msk.msra.mxu3 %vm62_vm0, %v53_v8  ;;  %1031 = vmatpush.xpose.msk.msra.mxu1 %vm62_vm0, %v53_v8 }
  0x26   :  { %984 = vmatpush.xpose.msk.msra.mxu0 %vm62_vm0, %v52_v10  ;;  %1035 = vmatpush.xpose.msk.msra.mxu2 %vm62_vm0, %v52_v10 }
  0x27   :  { %1036 = vmatpush.xpose.msk.msra.mxu3 %vm62_vm0, %v52_v10  ;;  %1034 = vmatpush.xpose.msk.msra.mxu1 %vm62_vm0, %v52_v10 }
  0x2a   :  { %985 = vmatpush.xpose.msk.msra.mxu0 %vm62_vm0, %v51_v12  ;;  %1038 = vmatpush.xpose.msk.msra.mxu2 %vm62_vm0, %v51_v12 }
  0x2b   :  { %1039 = vmatpush.xpose.msk.msra.mxu3 %vm62_vm0, %v51_v12  ;;  %1037 = vmatpush.xpose.msk.msra.mxu1 %vm62_vm0, %v51_v12 }
  0x2e   :  { %986 = vmatpush.xpose.msk.msra.mxu0 %vm62_vm0, %v50_v14  ;;  %1041 = vmatpush.xpose.msk.msra.mxu2 %vm62_vm0, %v50_v14 }
  0x2f   :  { %1042 = vmatpush.xpose.msk.msra.mxu3 %vm62_vm0, %v50_v14  ;;  %1040 = vmatpush.xpose.msk.msra.mxu1 %vm62_vm0, %v50_v14 }
  0x32   :  { %987 = vmatpush.xpose.msk.msra.mxu0 %vm62_vm0, %v49_v15  ;;  %1044 = vmatpush.xpose.msk.msra.mxu2 %vm62_vm0, %v49_v15 }
  0x33   :  { %1045 = vmatpush.xpose.msk.msra.mxu3 %vm62_vm0, %v49_v15  ;;  %1043 = vmatpush.xpose.msk.msra.mxu1 %vm62_vm0, %v49_v15 }
  0x36   :  { %988 = vmatpush.xpose.msk.msra.mxu0 %vm62_vm0, %v48_v16  ;;  %1047 = vmatpush.xpose.msk.msra.mxu2 %vm62_vm0, %v48_v16 }
  0x37   :  { %1048 = vmatpush.xpose.msk.msra.mxu3 %vm62_vm0, %v48_v16  ;;  %1046 = vmatpush.xpose.msk.msra.mxu1 %vm62_vm0, %v48_v16 }
  0x3a   :  { %989 = vmatpush.xpose.msk.msra.mxu0 %vm62_vm0, %v47_v17  ;;  %1050 = vmatpush.xpose.msk.msra.mxu2 %vm62_vm0, %v47_v17 }
  0x3b   :  { %1051 = vmatpush.xpose.msk.msra.mxu3 %vm62_vm0, %v47_v17  ;;  %1049 = vmatpush.xpose.msk.msra.mxu1 %vm62_vm0, %v47_v17 }
  0x3e   :  { %990 = vmatpush.xpose.msk.msra.mxu0 %vm62_vm0, %v46_v18  ;;  %1053 = vmatpush.xpose.msk.msra.mxu2 %vm62_vm0, %v46_v18 }
  0x3f   :  { %1054 = vmatpush.xpose.msk.msra.mxu3 %vm62_vm0, %v46_v18  ;;  %1052 = vmatpush.xpose.msk.msra.mxu1 %vm62_vm0, %v46_v18 }
  0x41   :  { %991 = vmatmul.msk.f32.vlgmr.msra.gmra.mxu0 %vm62_vm0, %v30_v19  ;;  %999 = vmatmul.msk.f32.vlgmr.msra.gmra.mxu2 %vm62_vm0, %v38_v20 }
  0x42   :  { %1003 = vmatmul.msk.f32.vlgmr.msra.gmra.mxu3 %vm62_vm0, %v42_v21  ;;  %995 = vmatmul.msk.f32.vlgmr.msra.gmra.mxu1 %vm62_vm0, %v34_v22 }
  0x49   :  { %1000 = vmatmul.msk.f32.gmra.mxu2 %vm62_vm0, %v39_v23  ;;  %992 = vmatmul.msk.f32.gmra.mxu0 %vm62_vm0, %v31_v24 }
  0x4a   :  { %1004 = vmatmul.msk.f32.gmra.mxu3 %vm62_vm0, %v43_v25  ;;  %996 = vmatmul.msk.f32.gmra.mxu1 %vm62_vm0, %v35_v26 }
  0x51   :  { %1001 = vmatmul.msk.f32.gmra.mxu2 %vm62_vm0, %v40_v27  ;;  %993 = vmatmul.msk.f32.gmra.mxu0 %vm62_vm0, %v32_v28 }
  0x52   :  { %1005 = vmatmul.msk.f32.gmra.mxu3 %vm62_vm0, %v44_v29  ;;  %997 = vmatmul.msk.f32.gmra.mxu1 %vm62_vm0, %v36_v30 }
  0x59   :  { %1002 = vmatmul.msk.f32.gmra.mxu2 %vm62_vm0, %v41_v31  ;;  %994 = vmatmul.msk.f32.gmra.mxu0 %vm62_vm0, %v33_v32 }
  0x5a   :  { %1006 = vmatmul.msk.f32.gmra.mxu3 %vm62_vm0, %v45_v33  ;;  %998 = vmatmul.msk.f32.gmra.mxu1 %vm62_vm0, %v37_v34 }
  0x7a   :  { %v244_v35 = vpop.permute.xlu0 %243 }
  0x7b   :  { %v324_v38 = vadd.f32 %v1061_v36, %v244_v35 }
  0x82   :  { %v407_v41 = vpop.permute.xlu0 %406 }
  0x83   :  { %vm454_vm2 = vcmp.eq.s32.totalorder %v407_v41, %v1062_v39 }
  0x84   :  { %vm577_vm3 = vmand %vm454_vm2, %vm526_vm1 }
  0x85   :  { %vm593_vm7 = vmxor %vm454_vm2, %vm1093_vm6 }
  0x86   :  { %vm609_vm8 = vmand %vm593_vm7, %vm526_vm1 }
  0xbe   :  { %v176_v42 = vpop.f32.mrf.mxu0 }
  0xbf   :  { %v340_v43 = vmul.f32 2.0, %v176_v42  ;;  %v188_v44 = vpop.f32.mrf.mxu1 }
  0xc1   :  { %v356_v45 = vsub.f32 %v324_v38, %v340_v43 }
  0xc3   :  { %v372_v46 = vmax.f32 %v356_v45, 0.0 }
  0xc4   :  { %v200_v47 = vpop.f32.mrf.mxu2 }
  0xc5   :  { %v625_v48 = vadd.f32 1e-09, %v372_v46  ;;  %v865_v49 = vsel %vm577_vm3, %v372_v46, 0.0  ;;  %v212_v50 = vpop.f32.mrf.mxu3 }
  0xc6   :  { %953 = vst [vmem:[#allocation4] sm:$0xff] %v865_v49  ;;  %v179_v51 = vpop.f32.mrf.mxu0 }
  0xc7   :  { %1063 = vrsqrt.f32 %v625_v48  ;;  %v191_v52 = vpop.f32.mrf.mxu1  ;;  %vm648_vm4 = vcmp.eq.f32.partialorder %v625_v48, inf  ;;  %v651_v4 = vand.u32 2147483648, %v625_v48  ;;  %vm650_vm5 = vcmp.eq.f32.partialorder %v625_v48, 0.0 }
  0xcc   :  { %v203_v53 = vpop.f32.mrf.mxu2 }
  0xcd   :  { %v1064_v54 = vpop.eup %1063  ;;  %v215_v55 = vpop.f32.mrf.mxu3 }
  0xce   :  { %v182_v56 = vpop.f32.mrf.mxu0  ;;  %v642_v57 = vmul.f32 %v1064_v54, %v625_v48 }
  0xcf   :  { %v194_v58 = vpop.f32.mrf.mxu1 }
  0xd0   :  { %v643_v59 = vmul.f32 %v1064_v54, %v642_v57 }
  0xd2   :  { %v644_v60 = vmul.f32 0.5, %v643_v59 }
  0xd4   :  { %v206_v61 = vpop.f32.mrf.mxu2  ;;  %v645_v62 = vsub.f32 1.5, %v644_v60 }
  0xd5   :  { %v218_v63 = vpop.f32.mrf.mxu3 }
  0xd6   :  { %v185_v0 = vpop.f32.mrf.mxu0  ;;  %v646_v1 = vmul.f32 %v1064_v54, %v645_v62 }
  0xd7   :  { %v197_v2 = vpop.f32.mrf.mxu1 }
  0xd8   :  { %v647_v3 = vmul.f32 %v646_v1, %v625_v48 }
  0xda   :  { %v649_v5 = vsel %vm648_vm4, %v625_v48, %v647_v3 }
  0xdb   :  { %v652_v6 = vsel %vm650_vm5, %v651_v4, %v649_v5 }
  0xdc   :  { %v209_v7 = vpop.f32.mrf.mxu2  ;;  %v833_v8 = vsub.f32 2.0, %v652_v6 }
  0xdd   :  { %v221_v9 = vpop.f32.mrf.mxu3 }
  0xde   :  { %v849_v10 = vmax.f32 %v833_v8, 0.0 }
  0xe0   :  { %v881_v11 = vmul.f32 %v849_v10, %v849_v10 }
  0xe2   :  { %v897_v12 = vsel %vm609_vm8, %v881_v11, 0.0 }
  0xe3   :  { %956 = vst [vmem:[#allocation4 + $0x8] sm:$0xff] %v897_v12 }
  0xe4   :  { %969 = dma.vmem_to_hbm [thread:$0]  %s962_s3, 256, %s964_s16, [#allocation5], %s1094_s17, %s1094_s17, %s1095_s18  }
  0xe5   :  { %1089 = dma.done.wait [#allocation5], 256  }
  0xe6   :  { %1090 = vsyncadd [#allocation5], 4294967040 }
  0xe7   :  { %974 = vsyncpa [#allocation5], 1 }

</bundles_post_ra>
